<compile_context>
chip_gen: v7x
topology: tpu7x:2x2x1
jax: 0.10.0
libtpu: 0.0.40
codegen_flags: <defaults>
</compile_context>

<pallas_src>
import functools

import jax
import jax.numpy as jnp
from jax import lax
from jax.experimental import pallas as pl
from jax.experimental.pallas import tpu as pltpu


# --------------------------------------------------------------------------
# Kernel
# --------------------------------------------------------------------------
def _crossen_kernel(sim_ref, diag_ref, out_ref, m_ref, l_ref, *,
                    n_total: int, tile_rows: int, tile_cols: int,
                    ragged_cols: bool):
    i = pl.program_id(0)            # row-tile index ("parallel")
    k = pl.program_id(1)            # column-tile index ("arbitrary", last)

    # ---- init the online-LSE accumulators on the first column step --------
    @pl.when(k == 0)
    def _():
        m_ref[...] = jnp.full_like(m_ref, -jnp.inf)
        l_ref[...] = jnp.zeros_like(l_ref)

    x = sim_ref[...]                                        # (tm, tc), native dtype

    # Column validity mask only when the last column tile is ragged
    # (static flag — zero cost for divisible N).
    if ragged_cols:
        col_ids = lax.broadcasted_iota(jnp.int32, x.shape, 1) + k * tile_cols
        col_ok = col_ids < n_total
        x_for_max = jnp.where(
            col_ok, x, jnp.asarray(jnp.finfo(x.dtype).min, dtype=x.dtype))
    else:
        x_for_max = x

    # Block max in the native dtype (exact ordering), then f32.
    blk_max = jnp.max(x_for_max, axis=-1, keepdims=True).astype(jnp.float32)
    m_new = jnp.maximum(m_ref[...], blk_max)                # (tm, 1) f32

    # Upcast only inside the exp chain — no resident full-tile f32 copy.
    p = jnp.exp(x.astype(jnp.float32) - m_new)              # (tm, tc) fused
    if ragged_cols:
        p = jnp.where(col_ok, p, 0.0)

    l_ref[...] = (l_ref[...] * jnp.exp(m_ref[...] - m_new)
                  + jnp.sum(p, axis=-1, keepdims=True))
    m_ref[...] = m_new

    # ---- finalize on the last column step ---------------------------------
    @pl.when(k == pl.num_programs(1) - 1)
    def _():
        lse = m_ref[...] + jnp.log(l_ref[...])              # (tm, 1)
        per_row = lse - diag_ref[...]                       # (tm, 1) f32
        row_ids = (lax.broadcasted_iota(jnp.int32, (tile_rows, 1), 0)
                   + i * tile_rows)
        per_row = jnp.where(row_ids < n_total, per_row, 0.0)  # ragged rows
        # One lane-dense, (8,128)-aligned partial-sum block per row tile.
        out_ref[...] = jnp.full(out_ref.shape, jnp.sum(per_row), jnp.float32)


# --------------------------------------------------------------------------
# Tiling heuristics (generation aware)
# --------------------------------------------------------------------------
def _vmem_capacity_bytes() -> int:
    try:
        return int(pltpu.get_tpu_info().vmem_capacity_bytes)
    except Exception:
        return 64 << 20             # v7x is the smallest — be conservative.


def _pick_tiles(n: int, itemsize: int) -> tuple[int, int]:
    """Choose (tile_rows, tile_cols) for an (n, n) similarity matrix."""
    vmem_cap = _vmem_capacity_bytes()
    budget = vmem_cap // 4          # ~16 MiB on v7x, ~32 MiB on v5e/v6e
    # Double-buffered native input block + headroom for the f32 exp pass.
    bytes_per_elem = 2 * itemsize + 4

    if n <= 128:
        return n, n                 # single block; dims equal the full array

    # Row tile: multiple of 128, roofline-friendly (<= 512), and small enough
    # that >= 2 row tiles exist so both v7x TensorCores get work.
    half_rounded = -(-(-(-n // 2)) // 128) * 128   # round_up(cdiv(n, 2), 128)
    tile_rows = min(512, half_rounded)

    # Column tile: full width if it fits, else largest fitting 128-multiple
    # (the online-LSE column loop bounds VMEM for any N).
    if tile_rows * n * bytes_per_elem <= budget:
        tile_cols = n
    else:
        tile_cols = (budget // (tile_rows * bytes_per_elem)) // 128 * 128
        tile_cols = max(128, min(tile_cols, n))
    return tile_rows, tile_cols


# --------------------------------------------------------------------------
# Wrapper
# --------------------------------------------------------------------------
def cross_en(sim_matrix: jax.Array, *, tile_rows: int | None = None,
             tile_cols: int | None = None) -> jax.Array:
    """Pallas equivalent of CrossEn.forward(sim_matrix) -> scalar loss.

    For best HBM bandwidth feed the similarity matrix as bf16 — the kernel
    upcasts to f32 internally, so the math stays f32-accurate.
    """
    assert sim_matrix.ndim == 2, "sim_matrix must be 2-D"
    n, m = sim_matrix.shape
    assert n == m, "CrossEn expects a square similarity matrix"

    itemsize = jnp.dtype(sim_matrix.dtype).itemsize
    auto_r, auto_c = _pick_tiles(n, itemsize)
    if tile_rows is None:
        tile_rows = auto_r
    if tile_cols is None:
        tile_cols = auto_c
    assert tile_rows == n or tile_rows % 128 == 0, \
        "tile_rows must equal N or be a multiple of 128"
    assert tile_cols == n or tile_cols % 128 == 0, \
        "tile_cols must equal N or be a multiple of 128"

    num_row_tiles = (n + tile_rows - 1) // tile_rows
    num_col_tiles = (n + tile_cols - 1) // tile_cols
    ragged_cols = (n % tile_cols) != 0

    # Positives precomputed once (N*4 bytes) — no second full-tile DMA stream
    # and no in-kernel iota/select diagonal extraction.
    diag = jnp.diagonal(sim_matrix).astype(jnp.float32).reshape(n, 1)

    vmem_cap = _vmem_capacity_bytes()
    vmem_limit = min(64 << 20, (vmem_cap * 3) // 4)   # 48 MiB v7x / 64 MiB v5e,v6e

    kernel = functools.partial(
        _crossen_kernel, n_total=n, tile_rows=tile_rows, tile_cols=tile_cols,
        ragged_cols=ragged_cols)

    partial_sums = pl.pallas_call(
        kernel,
        out_shape=jax.ShapeDtypeStruct((num_row_tiles, 8, 128), jnp.float32),
        grid_spec=pltpu.PrefetchScalarGridSpec(
            num_scalar_prefetch=0,
            grid=(num_row_tiles, num_col_tiles),
            in_specs=[
                # Streamed (row-tile, col-tile) block of the similarity matrix.
                pl.BlockSpec((tile_rows, tile_cols), lambda i, k: (i, k)),
                # Positives for this row tile (resident across the k loop).
                pl.BlockSpec((tile_rows, 1), lambda i, k: (i, 0)),
            ],
            out_specs=pl.BlockSpec((1, 8, 128), lambda i, k: (i, 0, 0)),
            scratch_shapes=[
                pltpu.VMEM((tile_rows, 1), jnp.float32),   # running max
                pltpu.VMEM((tile_rows, 1), jnp.float32),   # running sum
            ],
        ),
        compiler_params=pltpu.CompilerParams(
            dimension_semantics=("parallel", "arbitrary"),
            vmem_limit_bytes=vmem_limit,
        ),
    )(sim_matrix, diag)

    # Tiny final reduction over per-row-tile partial sums.
    return jnp.sum(partial_sums[:, 0, 0]) * (1.0 / float(n))


# --------------------------------------------------------------------------
# Reference + tests
# --------------------------------------------------------------------------
def _reference_cross_en(sim_matrix: jax.Array) -> jax.Array:
    logpt = jax.nn.log_softmax(sim_matrix.astype(jnp.float32), axis=-1)
    return -jnp.mean(jnp.diag(logpt))


if __name__ == "__main__":
    k0, k1, k2 = jax.random.split(jax.random.PRNGKey(0), 3)

    # 1) Small single-block case (batch of 8 similarity scores).
    N = 8
    sim = jax.random.normal(k0, (N, N), dtype=jnp.float32) * 4.0
    loss = jax.block_until_ready(cross_en(sim))
    ref = jax.block_until_ready(_reference_cross_en(sim))
    assert jnp.allclose(loss, ref, rtol=5e-5, atol=5e-5), (loss, ref)

    # 2) Multi-row-tile + ragged rows, full-width columns (auto column tile).
    N2 = 200
    sim2 = jax.random.normal(k1, (N2, N2), dtype=jnp.float32) * 2.0
    loss2 = jax.block_until_ready(cross_en(sim2, tile_rows=128))
    ref2 = jax.block_until_ready(_reference_cross_en(sim2))
    assert jnp.allclose(loss2, ref2, rtol=5e-5, atol=5e-5), (loss2, ref2)

    # 3) Forced column tiling: exercises the online-LSE accumulator across
    #    column steps plus the ragged-column mask.
    loss3 = jax.block_until_ready(cross_en(sim2, tile_rows=128, tile_cols=128))
    assert jnp.allclose(loss3, ref2, rtol=5e-5, atol=5e-5), (loss3, ref2)

    # 4) bf16 input contract (bandwidth-friendly path); math stays f32.
    N4 = 256
    sim4 = (jax.random.normal(k2, (N4, N4), dtype=jnp.float32) * 3.0
            ).astype(jnp.bfloat16)
    loss4 = jax.block_until_ready(cross_en(sim4))
    ref4 = jax.block_until_ready(_reference_cross_en(sim4))
    assert jnp.allclose(loss4, ref4, rtol=1e-3, atol=1e-3), (loss4, ref4)

    print("KERNEL_OK")
</pallas_src>

<mosaic_0001>
module attributes {stable_mosaic.version = 11 : i64} {
  func.func @_crossen_kernel(%arg0: i32, %arg1: i32, %arg2: memref<8x8xf32, #tpu.memory_space<vmem>>, %arg3: memref<8x1xf32, #tpu.memory_space<vmem>>, %arg4: memref<1x8x128xf32, #tpu.memory_space<vmem>>, %arg5: memref<8x1xf32, #tpu.memory_space<vmem>>, %arg6: memref<8x1xf32, #tpu.memory_space<vmem>>) attributes {dimension_semantics = [#tpu.dimension_semantics<parallel>, #tpu.dimension_semantics<arbitrary>], iteration_bounds = array<i64: 1, 1>, scalar_prefetch = 0 : i64, scratch_operands = 2 : i64, tpu.core_type = #tpu.core_type<tc>, window_params = [{transform_indices = @transform_0, window_bounds = array<i64: 8, 8>}, {transform_indices = @transform_1, window_bounds = array<i64: 8, 1>}, {transform_indices = @transform_2, window_bounds = array<i64: 1, 8, 128>}]} {
    %c0_i32 = arith.constant 0 : i32
    %0 = arith.cmpi eq, %arg1, %c0_i32 : i32
    %1 = arith.extui %0 : i1 to i32
    %c0_i32_0 = arith.constant 0 : i32
    %2 = arith.cmpi ne, %1, %c0_i32_0 : i32
    scf.if %2 {
      %cst_15 = arith.constant 0xFF800000 : f32
      %24 = vector.broadcast %cst_15 : f32 to vector<8x1xf32>
      %c0_16 = arith.constant 0 : index
      %c0_17 = arith.constant 0 : index
      %25 = vector.load %arg5[%c0_16, %c0_17] : memref<8x1xf32, #tpu.memory_space<vmem>>, vector<8x1xf32>
      tpu.vector_store %arg5[%c0_16, %c0_17], %24 {strides = array<i32>} : memref<8x1xf32, #tpu.memory_space<vmem>>, vector<8x1xf32>,
      %cst_18 = arith.constant 0.000000e+00 : f32
      %26 = vector.broadcast %cst_18 : f32 to vector<8x1xf32>
      %c0_19 = arith.constant 0 : index
      %c0_20 = arith.constant 0 : index
      %27 = vector.load %arg6[%c0_19, %c0_20] : memref<8x1xf32, #tpu.memory_space<vmem>>, vector<8x1xf32>
      tpu.vector_store %arg6[%c0_19, %c0_20], %26 {strides = array<i32>} : memref<8x1xf32, #tpu.memory_space<vmem>>, vector<8x1xf32>,
    } else {
    }
    %c0 = arith.constant 0 : index
    %c0_1 = arith.constant 0 : index
    %3 = vector.load %arg2[%c0, %c0_1] : memref<8x8xf32, #tpu.memory_space<vmem>>, vector<8x8xf32>
    %cst = arith.constant dense<0xFF800000> : vector<8xf32>
    %4 = vector.multi_reduction <maximumf>, %3, %cst [1] : vector<8x8xf32> to vector<8xf32>
    %5 = vector.shape_cast %4 : vector<8xf32> to vector<8x1xf32>
    %c0_2 = arith.constant 0 : index
    %c0_3 = arith.constant 0 : index
    %6 = vector.load %arg5[%c0_2, %c0_3] : memref<8x1xf32, #tpu.memory_space<vmem>>, vector<8x1xf32>
    %7 = arith.maximumf %6, %5 : vector<8x1xf32>
    %8 = vector.broadcast %7 : vector<8x1xf32> to vector<8x8xf32>
    %9 = arith.subf %3, %8 : vector<8x8xf32>
    %10 = math.exp %9 : vector<8x8xf32>
    %c0_4 = arith.constant 0 : index
    %c0_5 = arith.constant 0 : index
    %11 = vector.load %arg6[%c0_4, %c0_5] : memref<8x1xf32, #tpu.memory_space<vmem>>, vector<8x1xf32>
    %c0_6 = arith.constant 0 : index
    %c0_7 = arith.constant 0 : index
    %12 = vector.load %arg5[%c0_6, %c0_7] : memref<8x1xf32, #tpu.memory_space<vmem>>, vector<8x1xf32>
    %13 = arith.subf %12, %7 : vector<8x1xf32>
    %14 = math.exp %13 : vector<8x1xf32>
    %15 = arith.mulf %11, %14 : vector<8x1xf32>
    %cst_8 = arith.constant dense<0.000000e+00> : vector<8xf32>
    %16 = vector.multi_reduction <add>, %10, %cst_8 [1] : vector<8x8xf32> to vector<8xf32>
    %17 = vector.shape_cast %16 : vector<8xf32> to vector<8x1xf32>
    %18 = arith.addf %15, %17 : vector<8x1xf32>
    %c0_9 = arith.constant 0 : index
    %c0_10 = arith.constant 0 : index
    %19 = vector.load %arg6[%c0_9, %c0_10] : memref<8x1xf32, #tpu.memory_space<vmem>>, vector<8x1xf32>
    tpu.vector_store %arg6[%c0_9, %c0_10], %18 {strides = array<i32>} : memref<8x1xf32, #tpu.memory_space<vmem>>, vector<8x1xf32>,
    %c0_11 = arith.constant 0 : index
    %c0_12 = arith.constant 0 : index
    %20 = vector.load %arg5[%c0_11, %c0_12] : memref<8x1xf32, #tpu.memory_space<vmem>>, vector<8x1xf32>
    tpu.vector_store %arg5[%c0_11, %c0_12], %7 {strides = array<i32>} : memref<8x1xf32, #tpu.memory_space<vmem>>, vector<8x1xf32>,
    %c0_i32_13 = arith.constant 0 : i32
    %21 = arith.cmpi eq, %arg1, %c0_i32_13 : i32
    %22 = arith.extui %21 : i1 to i32
    %c0_i32_14 = arith.constant 0 : i32
    %23 = arith.cmpi ne, %22, %c0_i32_14 : i32
    scf.if %23 {
      %c0_15 = arith.constant 0 : index
      %c0_16 = arith.constant 0 : index
      %24 = vector.load %arg5[%c0_15, %c0_16] : memref<8x1xf32, #tpu.memory_space<vmem>>, vector<8x1xf32>
      %c0_17 = arith.constant 0 : index
      %c0_18 = arith.constant 0 : index
      %25 = vector.load %arg6[%c0_17, %c0_18] : memref<8x1xf32, #tpu.memory_space<vmem>>, vector<8x1xf32>
      %26 = math.log %25 : vector<8x1xf32>
      %27 = arith.addf %24, %26 : vector<8x1xf32>
      %c0_19 = arith.constant 0 : index
      %c0_20 = arith.constant 0 : index
      %28 = vector.load %arg3[%c0_19, %c0_20] : memref<8x1xf32, #tpu.memory_space<vmem>>, vector<8x1xf32>
      %29 = arith.subf %27, %28 : vector<8x1xf32>
      %30 = tpu.iota {dimensions = array<i32: 0>} : vector<8x1xi32>
      %c8_i32 = arith.constant 8 : i32
      %31 = arith.muli %arg0, %c8_i32 : i32
      %32 = vector.broadcast %31 : i32 to vector<8x1xi32>
      %33 = arith.addi %30, %32 : vector<8x1xi32>
      %c8_i32_21 = arith.constant 8 : i32
      %34 = vector.broadcast %c8_i32_21 : i32 to vector<8x1xi32>
      %35 = arith.cmpi slt, %33, %34 : vector<8x1xi32>
      %cst_22 = arith.constant 0.000000e+00 : f32
      %36 = vector.broadcast %cst_22 : f32 to vector<8x1xf32>
      %37 = arith.select %35, %29, %36 : vector<8x1xi1>, vector<8x1xf32>
      %38 = vector.shape_cast %37 : vector<8x1xf32> to vector<1x8x1xf32>
      %cst_23 = arith.constant dense<0.000000e+00> : vector<1xf32>
      %39 = vector.multi_reduction <add>, %38, %cst_23 [1, 2] : vector<1x8x1xf32> to vector<1xf32>
      %40 = vector.shape_cast %39 : vector<1xf32> to vector<1x1x1xf32>
      %41 = vector.extract %40[0, 0, 0] : f32 from vector<1x1x1xf32>
      %42 = vector.broadcast %41 : f32 to vector<1x8x128xf32>
      %c0_24 = arith.constant 0 : index
      %c0_25 = arith.constant 0 : index
      %c0_26 = arith.constant 0 : index
      %43 = vector.load %arg4[%c0_24, %c0_25, %c0_26] : memref<1x8x128xf32, #tpu.memory_space<vmem>>, vector<1x8x128xf32>
      tpu.vector_store %arg4[%c0_24, %c0_25, %c0_26], %42 {strides = array<i32>} : memref<1x8x128xf32, #tpu.memory_space<vmem>>, vector<1x8x128xf32>,
    } else {
    }
    return
  }
  func.func @transform_0(%arg0: i32, %arg1: i32) -> (i32, i32) {
    %c0_i32 = arith.constant 0 : i32
    return %arg0, %arg1 : i32, i32
  }
  func.func @transform_1(%arg0: i32, %arg1: i32) -> (i32, i32) {
    %c0_i32 = arith.constant 0 : i32
    %c0_i32_0 = arith.constant 0 : i32
    return %arg0, %c0_i32 : i32, i32
  }
  func.func @transform_2(%arg0: i32, %arg1: i32) -> (i32, i32, i32) {
    %c0_i32 = arith.constant 0 : i32
    %c0_i32_0 = arith.constant 0 : i32
    %c0_i32_1 = arith.constant 0 : i32
    return %arg0, %c0_i32, %c0_i32_0 : i32, i32, i32
  }
}

</mosaic_0001>

<bundles_post_ra>
// kernel: tpu_custom_call.1
= control target key start
LH: loop header
LB: loop body
LE: loop exit
PB: predicated region body
PF: predicated region fallthrough
CT: control target
= control target key end

     0   :  { %vm20_vm0 = vcmask 64512   ;;  %s170_s0 = inlined_call_operand.vmem [shape: f32[8,8], index: 0, kind: input, shape index: {}]   ;;  %s171_s1 = inlined_call_operand.vmem [shape: f32[8,1], index: 1, kind: input, shape index: {}]   ;;  %s172_s2 = inlined_call_operand.hbm [shape: f32[1,8,128], index: 2, kind: output, shape index: {}]  }
   0x1   :  { %v19_v0 = vld [vmem:[%s170_s0] sm:$0xff] }
   0x2   :  { %7 = vsyncpa [#allocation5], 0  ;;  %v21_v1 = vsel %vm20_vm0, %v19_v0, -inf  ;;  %vm16_vm1 = vcmask 7168   ;;  %v126_v2 = vmov -inf   ;;  %v127_v3 = vmov 0  }
   0x3   :  { %22 = vmax.xlane.f32.xlu0 %v21_v1  ;;  %17 = vst.msk [vmem:[#allocation2] sm:$0xff] %vm16_vm1, %v126_v2  ;;  %v128_v4 = vmov 0.0   ;;  %v54_v24 = vld [vmem:[%s171_s1] sm:$0xff]  ;;  %s129_s12 = smov [#allocation4]  }
   0x4   :  { %95 = vset.pattern.permute.xlu0 %v127_v3  ;;  %18 = vst.msk [vmem:[#allocation3] sm:$0xff] %vm16_vm1, %v128_v4  ;;  %s81_s13 = sshll.u32 %s129_s12, 4  ;;  %s82_s13 = int_to_ptr.vmem [resolvable:$true] %s81_s13 }
   0x5   :  { %s102_s1 = scalar_lea.vmem %s82_s13, 128  ;;  %p107_p1 = scmp.lt.s32.totalorder %s82_s13, %s82_s13 }
   0x6   :  { %p103_p0 = scmp.ne.s32.totalorder %s82_s13, %s102_s1  ;;  %p108_p2 = scmp.lt.s32.totalorder %s102_s1, %s102_s1 }
   0x8   :  { %p109_p3 = por %p108_p2, %p107_p1 }
   0xa   :  { %v24_v5 = vld [vmem:[#allocation2] sm:$0xff]  ;;  %p110_p4 = pnand %p109_p3, %p103_p0 }
   0xb   :  { %v34_v16 = vld [vmem:[#allocation3] sm:$0xff] }
  0x90   :  { %v23_v6 = vpop.xlane.xlu0 %22 }
  0x91   :  { %v25_v7 = vmax.f32 %v24_v5, %v23_v6 }
  0x93   :  { %v35_v8 = vsub.f32 %v24_v5, %v25_v7  ;;  %45 = vst.msk [vmem:[#allocation2] sm:$0xff] %vm16_vm1, %v25_v7  ;;  %28 = vperm.xlu0 %95, %v25_v7  }
  0x95   :  { %v36_v14 = vmul.f32 1.442695, %v35_v8 }
  0x9a   :  { %v49_v23 = vld [vmem:[#allocation2] sm:$0xff] }
 0x112   :  { %v29_v9 = vpop.permute.xlu0 %28 }
 0x113   :  { %v31_v10 = vsub.f32 %v19_v0, %v29_v9 }
 0x115   :  { %v32_v11 = vmul.f32 1.442695, %v31_v10 }
 0x117   :  { %96 = vpow2.f32 %v32_v11 }
 0x118   :  { %98 = vpow2.f32 %v36_v14 }
 0x121   :  { %v97_v12 = vpop.eup %96 }
 0x122   :  { %v39_v13 = vsel %vm20_vm0, %v97_v12, 0.0  ;;  %v99_v15 = vpop.eup %98 }
 0x123   :  { %40 = vadd.xlane.f32.xlu1 %v39_v13  ;;  %v38_v17 = vmul.f32 %v99_v15, %v34_v16 }
 0x1b0   :  { %v41_v18 = vpop.xlane.xlu1 %40 }
 0x1b1   :  { %v42_v19 = vadd.f32 %v41_v18, %v38_v17 }
 0x1b3   :  { %44 = vst.msk [vmem:[#allocation3] sm:$0xff] %vm16_vm1, %v42_v19 }
 0x1ba   :  { %v50_v20 = vld [vmem:[#allocation3] sm:$0xff] }
 0x1bb   :  { %100 = vlog2.f32 %v50_v20 }
 0x1c5   :  { %v101_v21 = vpop.eup %100 }
 0x1c6   :  { %v52_v22 = vmul.f32 0.6931472, %v101_v21 }
 0x1c8   :  { %v53_v25 = vadd.f32 %v52_v22, %v49_v23 }
 0x1ca   :  { %v55_v26 = vsub.f32 %v53_v25, %v54_v24 }
 0x1cc   :  { %v63_v27 = vsel %vm16_vm1, %v55_v26, 0.0 }
 0x1cd   :  { %64 = vadd.xlane.f32.xlu1 %v63_v27 }
 0x25a   :  { %v65_v28 = vpop.xlane.xlu1 %64 }
 0x25b   :  { %v66_v29 = vrot.slane %v65_v28, 4 }
 0x25d   :  { %v67_v30 = vadd.f32 %v66_v29, %v65_v28 }
 0x25f   :  { %v68_v31 = vrot.slane %v67_v30, 2 }
 0x261   :  { %v69_v32 = vadd.f32 %v68_v31, %v67_v30 }
 0x263   :  { %v70_v33 = vrot.slane %v69_v32, 1 }
 0x265   :  { %v71_v34 = vadd.f32 %v70_v33, %v69_v32 }
 0x267   :  { %89 = vpush %v71_v34 }
 0x298   :  { %s90_s14 = spop %89 }
 0x299   :  { %v73_v35 = vstv %s90_s14 }
 0x29a   :  { %74 = vst [vmem:[#allocation4] sm:$0xff] %v73_v35 }
 0x29b   :  { %113 = shalt.err (!%p110_p4)
}
 0x29c   :  { %s114_s17 = scalar_lea.hbm %s172_s2, 128 }
 0x29d   :  { %p115_p5 = scmp.ne.s32.totalorder %s172_s2, %s114_s17  ;;  %p118_p6 = scmp.lt.u32.totalorder %s114_s17, %s172_s2 }
 0x29f   :  { %p120_p7 = pnand %p118_p6, %p115_p5 }
 0x2a1   :  { %123 = shalt.err (!%p120_p7)
}
 0x2a2   :  { %84 = dma.vmem_to_hbm [thread:$0]  %s82_s13, 128, %s172_s2, [#allocation5]  }
 0x2a3   :  { %124 = dma.done.wait [#allocation5], 128  }
 0x2a4   :  { %125 = vsyncadd [#allocation5], 4294967168 }
 0x2a5   :  { %88 = vsyncpa [#allocation5], 1 }

</bundles_post_ra>
